<compile_context>
chip_gen: v7x
topology: tpu7x:2x2x1
jax: 0.10.0
libtpu: 0.0.40
codegen_flags: <defaults>
</compile_context>

<pallas_src>
import jax
import jax.numpy as jnp
from jax.experimental import pallas as pl
from jax.experimental.pallas import tpu as pltpu

_LANE = 128
_SUBLANE = 16                      # satisfies f32 (8-row) and bf16 (16-row) packing
_COMPUTE_DTYPE = jnp.bfloat16      # MXU-native on v5e / v6e / v7x


def _round_up(n, m):
    return ((n + m - 1) // m) * m


def _mlp_kernel(x_ref, w1_ref, b1_ref, w2_ref, b2_ref, out_ref):
    # On-chip f32 -> bf16 cast (free VPU filler under the DMA bound); both
    # matmuls accumulate in f32 on the MXU via preferred_element_type.
    x = x_ref[...].astype(w1_ref.dtype)
    h = jnp.dot(x, w1_ref[...], preferred_element_type=jnp.float32)
    # Bias + ReLU epilogue in f32 (v5e VPU has no bf16 VALU).
    h = jnp.maximum(h + b1_ref[...], 0.0)
    out = jnp.dot(h.astype(w2_ref.dtype), w2_ref[...],
                  preferred_element_type=jnp.float32) + b2_ref[...]
    out_ref[...] = out.astype(out_ref.dtype)


def prepare_params(w1, b1, w2, b2):
    """Pad/cast the parameters ONCE (hoisted out of the per-call path).

    w1: (D, hidden)  == torch linear.weight.T
    b1: (hidden,)
    w2: (hidden, num_classes) == torch hidden_linear.weight.T
    b2: (num_classes,)
    """
    D, H = w1.shape
    H2, C = w2.shape
    assert H2 == H, "weight shapes inconsistent"
    Hp = _round_up(H, _LANE)
    Cp = _round_up(C, _LANE)
    cd = _COMPUTE_DTYPE
    # Zero padding is exact: ReLU(0)=0 and zero weight rows/cols contribute 0.
    w1p = jnp.zeros((D, Hp), cd).at[:, :H].set(w1.astype(cd))
    w2p = jnp.zeros((Hp, Cp), cd).at[:H, :C].set(w2.astype(cd))
    b1p = jnp.zeros((1, Hp), jnp.float32).at[0, :H].set(b1.astype(jnp.float32))
    b2p = jnp.zeros((1, Cp), jnp.float32).at[0, :C].set(b2.astype(jnp.float32))
    return {"w1": w1p, "b1": b1p, "w2": w2p, "b2": b2p,
            "input_size": D, "num_classes": C}


def mnist_nn_forward(x_nchw, params, *, batch_tile=1024, out_dtype=jnp.bfloat16):
    """Forward pass of MnistNN.  Returns (B, num_classes) in `out_dtype`.

    Note: matmul operands are rounded to bf16 (f32 accumulation), so results
    differ from a pure-f32 PyTorch reference at the ~1e-2 level.
    """
    B = x_nchw.shape[0]
    x = x_nchw.reshape(B, -1).astype(jnp.float32)   # torch .view(size(0), -1)
    D = params["input_size"]
    assert x.shape[1] == D, f"flattened input dim {x.shape[1]} != {D}"
    C = params["num_classes"]
    w1p, b1p, w2p, b2p = params["w1"], params["b1"], params["w2"], params["b2"]
    Hp, Cp = w1p.shape[1], w2p.shape[1]

    # ---- batch tiling ------------------------------------------------------
    Bmin = _round_up(B, _SUBLANE)                 # minimal padded batch
    max_tiles = max(Bmin // _SUBLANE, 1)
    # >= 2 grid steps whenever possible so ("parallel",) shards across both
    # v7x TensorCores; neutral on single-TC v5e/v6e.
    want_tiles = max(2, pl.cdiv(Bmin, max(batch_tile, _SUBLANE)))
    n_tiles = min(want_tiles, max_tiles)
    TB = _round_up(pl.cdiv(Bmin, n_tiles), _SUBLANE)
    Bp = TB * n_tiles

    # Pad batch only (zero rows); feature dim D is read at its natural size
    # (block == full array dim, so D need not be a multiple of 128).
    if Bp != B:
        x = jnp.zeros((Bp, D), jnp.float32).at[:B].set(x)

    # ---- VMEM budget / compiler params ------------------------------------
    out_isz = jnp.dtype(out_dtype).itemsize
    x_tile_b = TB * D * 4
    out_tile_b = TB * Cp * out_isz
    w_bytes = D * Hp * 2 + Hp * Cp * 2
    vmem_est = 2 * (x_tile_b + out_tile_b) + 2 * w_bytes + TB * Hp * 4 + (1 << 20)
    cp_kwargs = {}
    if vmem_est > 12 * 1024 * 1024:
        # Only needed for very large tiles on v5e (16 MiB scoped default).
        cp_kwargs["vmem_limit_bytes"] = min(int(1.5 * vmem_est), 56 * 1024 * 1024)

    cost = pl.CostEstimate(
        flops=2 * Bp * (D * Hp + Hp * Cp),
        transcendentals=0,
        bytes_accessed=Bp * D * 4 + w_bytes + Bp * Cp * out_isz,
    )

    out = pl.pallas_call(
        _mlp_kernel,
        out_shape=jax.ShapeDtypeStruct((Bp, Cp), out_dtype),
        grid=(n_tiles,),
        in_specs=[
            pl.BlockSpec((TB, D), lambda i: (i, 0)),    # x: f32, tiled over batch
            pl.BlockSpec((D, Hp), lambda i: (0, 0)),    # w1: VMEM-resident
            pl.BlockSpec((1, Hp), lambda i: (0, 0)),    # b1
            pl.BlockSpec((Hp, Cp), lambda i: (0, 0)),   # w2
            pl.BlockSpec((1, Cp), lambda i: (0, 0)),    # b2
        ],
        out_specs=pl.BlockSpec((TB, Cp), lambda i: (i, 0)),
        compiler_params=pltpu.CompilerParams(
            dimension_semantics=("parallel",), **cp_kwargs),
        cost_estimate=cost,
    )(x, w1p, b1p, w2p, b2p)

    return out[:B, :C]


def _init_linear(key, fan_in, fan_out):
    # Deterministic init mimicking nn.Linear's uniform(-1/sqrt(fan_in), +...).
    kw, kb = jax.random.split(key)
    bound = 1.0 / jnp.sqrt(fan_in)
    w = jax.random.uniform(kw, (fan_in, fan_out), jnp.float32, -bound, bound)
    b = jax.random.uniform(kb, (fan_out,), jnp.float32, -bound, bound)
    return w, b


if __name__ == "__main__":
    # Small MNIST-ish shapes: batch=8, 1x16x16 images -> input_size=256,
    # hidden_size=32, num_classes=10.
    B, Cch, Himg, Wimg = 8, 1, 16, 16
    input_size = Cch * Himg * Wimg       # 256
    hidden_size = 32
    num_classes = 10

    key = jax.random.PRNGKey(0)
    kx, k1, k2 = jax.random.split(key, 3)

    x = jax.random.normal(kx, (B, Cch, Himg, Wimg), jnp.float32)
    w1, b1 = _init_linear(k1, input_size, hidden_size)
    w2, b2 = _init_linear(k2, hidden_size, num_classes)

    params = prepare_params(w1, b1, w2, b2)          # pad/cast weights once
    out = mnist_nn_forward(x, params)
    out = jax.block_until_ready(out)

    # Reference in plain JAX with the same bf16 operand rounding / f32 accumulate.
    xf = x.reshape(B, -1).astype(jnp.bfloat16)
    h_ref = jnp.dot(xf, w1.astype(jnp.bfloat16),
                    preferred_element_type=jnp.float32) + b1
    h_ref = jnp.maximum(h_ref, 0.0)
    ref = jnp.dot(h_ref.astype(jnp.bfloat16), w2.astype(jnp.bfloat16),
                  preferred_element_type=jnp.float32) + b2

    assert out.shape == (B, num_classes)
    err = jnp.max(jnp.abs(out.astype(jnp.float32) - ref))
    assert jnp.allclose(out.astype(jnp.float32), ref, atol=2e-2, rtol=2e-2), float(err)
    print("KERNEL_OK")
</pallas_src>

<mosaic_0001>
module attributes {stable_mosaic.version = 11 : i64} {
  func.func @_mlp_kernel(%arg0: i32, %arg1: memref<16x256xf32, #tpu.memory_space<vmem>>, %arg2: memref<256x128xbf16, #tpu.memory_space<vmem>>, %arg3: memref<1x128xf32, #tpu.memory_space<vmem>>, %arg4: memref<128x128xbf16, #tpu.memory_space<vmem>>, %arg5: memref<1x128xf32, #tpu.memory_space<vmem>>, %arg6: memref<16x128xbf16, #tpu.memory_space<vmem>>) attributes {dimension_semantics = [#tpu.dimension_semantics<parallel>], iteration_bounds = array<i64: 1>, scalar_prefetch = 0 : i64, scratch_operands = 0 : i64, tpu.core_type = #tpu.core_type<tc>, window_params = [{transform_indices = @transform_0, window_bounds = array<i64: 16, 256>}, {pipeline_mode = #tpu.pipeline_mode<synchronous>, transform_indices = @transform_1, window_bounds = array<i64: 256, 128>}, {pipeline_mode = #tpu.pipeline_mode<synchronous>, transform_indices = @transform_2, window_bounds = array<i64: 1, 128>}, {pipeline_mode = #tpu.pipeline_mode<synchronous>, transform_indices = @transform_3, window_bounds = array<i64: 128, 128>}, {pipeline_mode = #tpu.pipeline_mode<synchronous>, transform_indices = @transform_4, window_bounds = array<i64: 1, 128>}, {transform_indices = @transform_5, window_bounds = array<i64: 16, 128>}]} {
    %c0 = arith.constant 0 : index
    %c0_0 = arith.constant 0 : index
    %0 = vector.load %arg1[%c0, %c0_0] : memref<16x256xf32, #tpu.memory_space<vmem>>, vector<16x256xf32>
    %1 = arith.truncf %0 : vector<16x256xf32> to vector<16x256xbf16>
    %c0_1 = arith.constant 0 : index
    %c0_2 = arith.constant 0 : index
    %2 = vector.load %arg2[%c0_1, %c0_2] : memref<256x128xbf16, #tpu.memory_space<vmem>>, vector<256x128xbf16>
    %cst = arith.constant dense<0.000000e+00> : vector<16x128xf32>
    %3 = tpu.matmul %1, %2, %cst {dimension_numbers = #tpu.dot_dimension_numbers<[1], [0], [0], [1], [0, 0, 1, 1], [], []>} : vector<16x256xbf16>, vector<256x128xbf16>, vector<16x128xf32> -> vector<16x128xf32>
    %c0_3 = arith.constant 0 : index
    %c0_4 = arith.constant 0 : index
    %4 = vector.load %arg3[%c0_3, %c0_4] : memref<1x128xf32, #tpu.memory_space<vmem>>, vector<1x128xf32>
    %5 = vector.broadcast %4 : vector<1x128xf32> to vector<16x128xf32>
    %6 = arith.addf %3, %5 : vector<16x128xf32>
    %cst_5 = arith.constant 0.000000e+00 : f32
    %7 = vector.broadcast %cst_5 : f32 to vector<16x128xf32>
    %8 = arith.maximumf %6, %7 : vector<16x128xf32>
    %9 = arith.truncf %8 : vector<16x128xf32> to vector<16x128xbf16>
    %c0_6 = arith.constant 0 : index
    %c0_7 = arith.constant 0 : index
    %10 = vector.load %arg4[%c0_6, %c0_7] : memref<128x128xbf16, #tpu.memory_space<vmem>>, vector<128x128xbf16>
    %cst_8 = arith.constant dense<0.000000e+00> : vector<16x128xf32>
    %11 = tpu.matmul %9, %10, %cst_8 {dimension_numbers = #tpu.dot_dimension_numbers<[1], [0], [0], [1], [0, 0, 1, 1], [], []>} : vector<16x128xbf16>, vector<128x128xbf16>, vector<16x128xf32> -> vector<16x128xf32>
    %c0_9 = arith.constant 0 : index
    %c0_10 = arith.constant 0 : index
    %12 = vector.load %arg5[%c0_9, %c0_10] : memref<1x128xf32, #tpu.memory_space<vmem>>, vector<1x128xf32>
    %13 = vector.broadcast %12 : vector<1x128xf32> to vector<16x128xf32>
    %14 = arith.addf %11, %13 : vector<16x128xf32>
    %15 = arith.truncf %14 : vector<16x128xf32> to vector<16x128xbf16>
    %c0_11 = arith.constant 0 : index
    %c0_12 = arith.constant 0 : index
    %16 = vector.load %arg6[%c0_11, %c0_12] : memref<16x128xbf16, #tpu.memory_space<vmem>>, vector<16x128xbf16>
    tpu.vector_store %arg6[%c0_11, %c0_12], %15 {strides = array<i32>} : memref<16x128xbf16, #tpu.memory_space<vmem>>, vector<16x128xbf16>,
    return
  }
  func.func @transform_0(%arg0: i32) -> (i32, i32) {
    %c0_i32 = arith.constant 0 : i32
    %c0_i32_0 = arith.constant 0 : i32
    return %arg0, %c0_i32 : i32, i32
  }
  func.func @transform_1(%arg0: i32) -> (i32, i32) {
    %c0_i32 = arith.constant 0 : i32
    %c0_i32_0 = arith.constant 0 : i32
    %c0_i32_1 = arith.constant 0 : i32
    return %c0_i32, %c0_i32_0 : i32, i32
  }
  func.func @transform_2(%arg0: i32) -> (i32, i32) {
    %c0_i32 = arith.constant 0 : i32
    %c0_i32_0 = arith.constant 0 : i32
    %c0_i32_1 = arith.constant 0 : i32
    return %c0_i32, %c0_i32_0 : i32, i32
  }
  func.func @transform_3(%arg0: i32) -> (i32, i32) {
    %c0_i32 = arith.constant 0 : i32
    %c0_i32_0 = arith.constant 0 : i32
    %c0_i32_1 = arith.constant 0 : i32
    return %c0_i32, %c0_i32_0 : i32, i32
  }
  func.func @transform_4(%arg0: i32) -> (i32, i32) {
    %c0_i32 = arith.constant 0 : i32
    %c0_i32_0 = arith.constant 0 : i32
    %c0_i32_1 = arith.constant 0 : i32
    return %c0_i32, %c0_i32_0 : i32, i32
  }
  func.func @transform_5(%arg0: i32) -> (i32, i32) {
    %c0_i32 = arith.constant 0 : i32
    %c0_i32_0 = arith.constant 0 : i32
    return %arg0, %c0_i32 : i32, i32
  }
}

</mosaic_0001>

<bundles_post_ra>
// kernel: tpu_custom_call.1
= control target key start
LH: loop header
LB: loop body
LE: loop exit
PB: predicated region body
PF: predicated region fallthrough
CT: control target
= control target key end

     0   :  { %10 = vsyncpa [#allocation3], 0  ;;  %s714_s0 = inlined_call_operand.hbm [shape: f32[16,256], index: 0, kind: input, shape index: {}]   ;;  %s715_s1 = inlined_call_operand.hbm [shape: bf16[256,128], index: 1, kind: input, shape index: {}]   ;;  %s716_s2 = inlined_call_operand.vmem [shape: f32[1,128], index: 2, kind: input, shape index: {}]   ;;  %s717_s3 = inlined_call_operand.hbm [shape: bf16[128,128], index: 3, kind: input, shape index: {}]   ;;  %s718_s4 = inlined_call_operand.vmem [shape: f32[1,128], index: 4, kind: input, shape index: {}]   ;;  %s719_s5 = inlined_call_operand.hbm [shape: bf16[16,128], index: 5, kind: output, shape index: {}]  }
   0x1   :  { %11 = vsyncpa [#allocation6], 0 }
   0x2   :  { %12 = vsyncpa [#allocation4], 0  ;;  %s602_s18 = smov [#allocation5]   ;;  %s508_s22 = scalar_lea.hbm %s715_s1, 2048 }
   0x3   :  { %s30_s19 = sshll.u32 %s602_s18, 4  ;;  %p509_p0 = scmp.ne.s32.totalorder %s715_s1, %s508_s22  ;;  %s31_s19 = int_to_ptr.vmem [resolvable:$true] %s30_s19 }
   0x4   :  { %p512_p1 = scmp.lt.u32.totalorder %s508_s22, %s715_s1 }
   0x6   :  { %p514_p2 = pnand %p512_p1, %p509_p0 }
   0x8   :  { %517 = shalt.err (!%p514_p2)
}
   0x9   :  { %s518_s27 = scalar_lea.vmem %s31_s19, 2048  ;;  %p523_p4 = scmp.lt.s32.totalorder %s31_s19, %s31_s19 }
   0xa   :  { %p519_p3 = scmp.ne.s32.totalorder %s31_s19, %s518_s27  ;;  %p524_p5 = scmp.lt.s32.totalorder %s518_s27, %s518_s27 }
   0xc   :  { %p525_p6 = por %p524_p5, %p523_p4 }
   0xe   :  { %p526_p7 = pnand %p525_p6, %p519_p3 }
  0x10   :  { %529 = shalt.err (!%p526_p7)
}
  0x11   :  { %s603_s28 = smov 64   ;;  %s604_s29 = smov 4  }
  0x12   :  { %36 = dma.hbm_to_vmem [thread:$0]  %s715_s1, 2048, %s31_s19, [#allocation6], %s603_s28, %s603_s28, %s604_s29  }
  0x13   :  { %s605_s7 = smov [#allocation2]   ;;  %s530_s11 = scalar_lea.hbm %s714_s0, 512 }
  0x14   :  { %s18_s8 = sshll.u32 %s605_s7, 4  ;;  %p531_p8 = scmp.ne.s32.totalorder %s714_s0, %s530_s11  ;;  %s19_s8 = int_to_ptr.vmem [resolvable:$true] %s18_s8 }
  0x15   :  { %p534_p9 = scmp.lt.u32.totalorder %s530_s11, %s714_s0 }
  0x17   :  { %p536_p10 = pnand %p534_p9, %p531_p8 }
  0x19   :  { %539 = shalt.err (!%p536_p10)
}
  0x1a   :  { %s540_s16 = scalar_lea.vmem %s19_s8, 512  ;;  %p545_p12 = scmp.lt.s32.totalorder %s19_s8, %s19_s8 }
  0x1b   :  { %p541_p11 = scmp.ne.s32.totalorder %s19_s8, %s540_s16  ;;  %p546_p13 = scmp.lt.s32.totalorder %s540_s16, %s540_s16 }
  0x1d   :  { %p547_p0 = por %p546_p13, %p545_p12 }
  0x1f   :  { %p548_p1 = pnand %p547_p0, %p541_p11 }
  0x21   :  { %551 = shalt.err (!%p548_p1)
}
  0x22   :  { %s606_s1 = smov 256   ;;  %s607_s17 = smov 16  }
  0x23   :  { %24 = dma.hbm_to_vmem [thread:$0]  %s714_s0, 512, %s19_s8, [#allocation3], %s606_s1, %s606_s1, %s607_s17  }
  0x24   :  { %s608_s20 = smov [#allocation7]   ;;  %s552_s24 = scalar_lea.hbm %s717_s3, 1024 }
  0x25   :  { %s44_s21 = sshll.u32 %s608_s20, 4  ;;  %p553_p2 = scmp.ne.s32.totalorder %s717_s3, %s552_s24  ;;  %s45_s21 = int_to_ptr.vmem [resolvable:$true] %s44_s21 }
  0x26   :  { %p556_p3 = scmp.lt.u32.totalorder %s552_s24, %s717_s3 }
  0x28   :  { %p558_p4 = pnand %p556_p3, %p553_p2 }
  0x2a   :  { %561 = shalt.err (!%p558_p4)
}
  0x2b   :  { %s562_s6 = scalar_lea.vmem %s45_s21, 1024  ;;  %p567_p6 = scmp.lt.s32.totalorder %s45_s21, %s45_s21 }
  0x2c   :  { %p563_p5 = scmp.ne.s32.totalorder %s45_s21, %s562_s6  ;;  %p568_p7 = scmp.lt.s32.totalorder %s562_s6, %s562_s6 }
  0x2e   :  { %p569_p8 = por %p568_p7, %p567_p6 }
  0x30   :  { %p570_p9 = pnand %p569_p8, %p563_p5 }
  0x32   :  { %573 = shalt.err (!%p570_p9)
}
  0x33   :  { %50 = dma.hbm_to_vmem [thread:$0]  %s717_s3, 1024, %s45_s21, [#allocation6], %s603_s28, %s603_s28, %s604_s29  }
  0x34   :  { %596 = dma.done.wait [#allocation3], 512  }
  0x35   :  { %597 = vsyncadd [#allocation3], 4294966784 }
  0x36   :  { %598 = dma.done.wait [#allocation6], 3072  }
  0x37   :  { %599 = vsyncadd [#allocation6], 4294964224  ;;  %v609_v0 = vmov 0.0   ;;  %v484_v1 = vld [vmem:[#allocation5 + $0x40] sm:$0xff]   ;;  %v486_v3 = vld [vmem:[#allocation5 + $0x48] sm:$0xff]   ;;  %vm610_vm0 = vmmov 0  }
  0x38   :  { %454 = vmatprep.subr.bf16.mxu1 %v609_v0  ;;  %v485_v2 = vld [vmem:[#allocation5] sm:$0xff]   ;;  %423 = vmatprep.subr.bf16.mxu0 %v484_v1  ;;  %v487_v4 = vld [vmem:[#allocation5 + $0x8] sm:$0xff]   ;;  %v488_v5 = vld [vmem:[#allocation5 + $0x50] sm:$0xff]   ;;  %s611_s11 = smov [#allocation8]  }
  0x39   :  { %424 = vmatpush3.bf16.msra.mxu0 %v485_v2  ;;  %v489_v6 = vld [vmem:[#allocation5 + $0x10] sm:$0xff]   ;;  %v490_v7 = vld [vmem:[#allocation5 + $0x58] sm:$0xff]   ;;  %v492_v9 = vld [vmem:[#allocation5 + $0x60] sm:$0xff]   ;;  %470 = vmatprep.mubr.msk.bf16.mxu1 %vm610_vm0, %v609_v0 }
  0x3a   :  { %425 = vmatprep.subr.bf16.mxu0 %v486_v3  ;;  %v491_v8 = vld [vmem:[#allocation5 + $0x18] sm:$0xff]   ;;  %v493_v10 = vld [vmem:[#allocation5 + $0x20] sm:$0xff]   ;;  %v494_v11 = vld [vmem:[#allocation5 + $0x68] sm:$0xff]  }
  0x3b   :  { %v64_v12 = vld [vmem:[#allocation2 + $0x8] sm:$0xff]  ;;  %v66_v13 = vld [vmem:[#allocation2 + $0x18] sm:$0xff]  ;;  %v500_v16 = vld [vmem:[#allocation7] sm:$0xff]  }
  0x3c   :  { %v495_v14 = vld [vmem:[#allocation5 + $0x28] sm:$0xff]   ;;  %v68_v15 = vpack.c.bf16 %v66_v13, %v64_v12  ;;  %v496_v17 = vld [vmem:[#allocation5 + $0x70] sm:$0xff]   ;;  %455 = vmatpush3.bf16.msra.mxu1 %v500_v16  ;;  %v498_v20 = vld [vmem:[#allocation5 + $0x78] sm:$0xff]  }
  0x3d   :  { %426 = vmatpush3.bf16.msra.mxu0 %v487_v4  ;;  %v501_v18 = vld [vmem:[#allocation7 + $0x8] sm:$0xff]   ;;  %456 = vmatprep.subr.bf16.mxu1 %v609_v0  ;;  %v497_v19 = vld [vmem:[#allocation5 + $0x30] sm:$0xff]   ;;  %v499_v22 = vld [vmem:[#allocation5 + $0x38] sm:$0xff]  }
  0x3e   :  { %427 = vmatprep.subr.bf16.mxu0 %v488_v5  ;;  %236 = vmatprep.mubr.bf16.mxu0 %v68_v15  ;;  %v502_v21 = vld [vmem:[#allocation7 + $0x10] sm:$0xff]   ;;  %v63_v23 = vld [vmem:[#allocation2] sm:$0xff]  ;;  %v503_v25 = vld [vmem:[#allocation7 + $0x18] sm:$0xff]  }
  0x3f   :  { %v65_v24 = vld [vmem:[#allocation2 + $0x10] sm:$0xff]  ;;  %v504_v27 = vld [vmem:[#allocation7 + $0x20] sm:$0xff]   ;;  %v505_v28 = vld [vmem:[#allocation7 + $0x28] sm:$0xff]  }
  0x40   :  { %457 = vmatpush3.bf16.msra.mxu1 %v501_v18  ;;  %v67_v26 = vpack.c.bf16 %v65_v24, %v63_v23  ;;  %v506_v29 = vld [vmem:[#allocation7 + $0x30] sm:$0xff]   ;;  %v507_v30 = vld [vmem:[#allocation7 + $0x38] sm:$0xff]   ;;  %v388_v32 = vld [vmem:[%s716_s2] ss:$0 sm:$0xff]  ;;  %s375_s2 = sshll.u32 %s611_s11, 4  ;;  %s376_s2 = int_to_ptr.vmem [resolvable:$true] %s375_s2 }
  0x41   :  { %428 = vmatpush3.bf16.msra.mxu0 %v489_v6  ;;  %458 = vmatprep.subr.bf16.mxu1 %v609_v0  ;;  %v405_v43 = vld [vmem:[%s718_s4] ss:$0 sm:$0xff]  ;;  %s574_s12 = scalar_lea.vmem %s376_s2, 128  ;;  %p579_p11 = scmp.lt.s32.totalorder %s376_s2, %s376_s2 }
  0x42   :  { %429 = vmatprep.subr.bf16.mxu0 %v490_v7  ;;  %p575_p10 = scmp.ne.s32.totalorder %s376_s2, %s574_s12  ;;  %p580_p12 = scmp.lt.s32.totalorder %s574_s12, %s574_s12 }
  0x44   :  { %459 = vmatpush3.bf16.msra.mxu1 %v502_v21  ;;  %p581_p13 = por %p580_p12, %p579_p11 }
  0x45   :  { %430 = vmatpush3.bf16.msra.mxu0 %v491_v8  ;;  %460 = vmatprep.subr.bf16.mxu1 %v609_v0 }
  0x46   :  { %431 = vmatprep.subr.bf16.mxu0 %v492_v9  ;;  %p582_p0 = pnand %p581_p13, %p575_p10 }
  0x48   :  { %461 = vmatpush3.bf16.msra.mxu1 %v503_v25 }
  0x49   :  { %432 = vmatpush3.bf16.msra.mxu0 %v493_v10  ;;  %462 = vmatprep.subr.bf16.mxu1 %v609_v0 }
  0x4a   :  { %433 = vmatprep.subr.bf16.mxu0 %v494_v11 }
  0x4c   :  { %463 = vmatpush3.bf16.msra.mxu1 %v504_v27 }
  0x4d   :  { %434 = vmatpush3.bf16.msra.mxu0 %v495_v14  ;;  %464 = vmatprep.subr.bf16.mxu1 %v609_v0 }
  0x4e   :  { %435 = vmatprep.subr.bf16.mxu0 %v496_v17 }
  0x50   :  { %465 = vmatpush3.bf16.msra.mxu1 %v505_v28 }
  0x51   :  { %436 = vmatpush3.bf16.msra.mxu0 %v497_v19  ;;  %466 = vmatprep.subr.bf16.mxu1 %v609_v0 }
  0x52   :  { %437 = vmatprep.subr.bf16.mxu0 %v498_v20 }
  0x54   :  { %467 = vmatpush3.bf16.msra.mxu1 %v506_v29 }
  0x55   :  { %438 = vmatpush3.bf16.msra.mxu0 %v499_v22  ;;  %468 = vmatprep.subr.bf16.mxu1 %v609_v0 }
  0x58   :  { %237 = vmatmul.mubr.bf16.vlgmr.msra.gmra.mrb[0].mxu0 %v67_v26  ;;  %469 = vmatpush3.bf16.msra.mxu1 %v507_v30 }
 0x12b   :  { %v439_v31 = vpop.f32.mrb[0].mxu0 }
 0x12c   :  { %v440_v33 = vpop.f32.mrb[1].mxu0 }
 0x12d   :  { %v441_v34 = vadd.f32 %v440_v33, %v439_v31  ;;  %v442_v35 = vpop.f32.mrb[2].mxu0 }
 0x12e   :  { %v443_v36 = vpop.f32.mrb[3].mxu0 }
 0x12f   :  { %v239_v37 = vadd.f32 %v441_v34, %v388_v32  ;;  %v444_v38 = vadd.f32 %v443_v36, %v442_v35 }
 0x131   :  { %v242_v39 = vadd.f32 %v444_v38, %v388_v32  ;;  %v245_v40 = vmax.f32 %v239_v37, 0.0 }
 0x133   :  { %v246_v41 = vmax.f32 %v242_v39, 0.0 }
 0x135   :  { %v247_v42 = vpack.c.bf16 %v246_v41, %v245_v40 }
 0x137   :  { %471 = vmatmul.mubr.bf16.vlgmr.msra.gmra.mrb[0].mxu1 %v247_v42 }
 0x20a   :  { %v353_v44 = vpop.f32.mrb[0].mxu1 }
 0x20b   :  { %v472_v45 = vpop.f32.mrb[1].mxu1  ;;  %v354_v47 = vadd.f32 %v405_v43, %v353_v44 }
 0x20c   :  { %v356_v46 = vpop.f32.mrb[2].mxu1 }
 0x20d   :  { %v357_v48 = vadd.f32 %v405_v43, %v356_v46  ;;  %v473_v49 = vpop.f32.mrb[3].mxu1 }
 0x20f   :  { %v421_v50 = vpack.c.bf16 %v357_v48, %v354_v47 }
 0x211   :  { %422 = vst [vmem:[#allocation8] sm:$0xff] %v421_v50  }
 0x212   :  { %585 = shalt.err (!%p582_p0)
}
 0x213   :  { %s586_s14 = scalar_lea.hbm %s719_s5, 128 }
 0x214   :  { %p587_p1 = scmp.ne.s32.totalorder %s719_s5, %s586_s14  ;;  %p590_p2 = scmp.lt.u32.totalorder %s586_s14, %s719_s5 }
 0x216   :  { %p592_p3 = pnand %p590_p2, %p587_p1 }
 0x218   :  { %595 = shalt.err (!%p592_p3)
}
 0x219   :  { %381 = dma.vmem_to_hbm [thread:$0]  %s376_s2, 128, %s719_s5, [#allocation4], %s603_s28, %s603_s28, %s604_s29  }
 0x21a   :  { %600 = dma.done.wait [#allocation4], 128  }
 0x21b   :  { %601 = vsyncadd [#allocation4], 4294967168 }
 0x21c   :  { %385 = vsyncpa [#allocation3], 1 }
 0x21d   :  { %386 = vsyncpa [#allocation6], 1 }
 0x21e   :  { %387 = vsyncpa [#allocation4], 1 }

</bundles_post_ra>
